<compile_context>
chip_gen: v7x
topology: tpu7x:2x2x1
jax: 0.10.0
libtpu: 0.0.40
codegen_flags: <defaults>
</compile_context>

<pallas_src>
import jax
import jax.numpy as jnp
from jax.experimental import pallas as pl
from jax.experimental.pallas import tpu as pltpu


def _round_up(a, b):
    return ((a + b - 1) // b) * b


# ----------------------------------------------------------------------------
# Pallas kernels
# ----------------------------------------------------------------------------
def _encode_l2norm_kernel(x_ref, w_ref, o_ref, acc_ref):
    """Tiled matmul (K-accumulated) with l2norm fused into the epilogue.

    grid = (M//tm, K//tk); the full output-feature dim N lives in one block so
    the row norm is available at the last K step.
    """
    k = pl.program_id(1)

    @pl.when(k == 0)
    def _():
        acc_ref[...] = jnp.zeros_like(acc_ref)

    # bf16 inputs, f32 accumulation on the MXU.
    acc_ref[...] += jnp.dot(
        x_ref[...], w_ref[...], preferred_element_type=jnp.float32
    )

    @pl.when(k == pl.num_programs(1) - 1)
    def _():
        acc = acc_ref[...]
        # PyTorch l2norm: X / (sqrt(sum(X^2, -1, keepdim)) + 1e-8)
        norm = jnp.sqrt(jnp.sum(acc * acc, axis=-1, keepdims=True)) + 1e-8
        o_ref[...] = (acc / norm).astype(o_ref.dtype)


def _sim_kernel(im_ref, s_ref, o_ref):
    """Similarity of pre-normalized rows: im @ s.T without materializing .T."""
    o_ref[...] = jax.lax.dot_general(
        im_ref[...],
        s_ref[...],
        dimension_numbers=(((1,), (1,)), ((), ())),
        preferred_element_type=jnp.float32,
    )


# ----------------------------------------------------------------------------
# Wrappers around pallas_call
# ----------------------------------------------------------------------------
def pallas_encode_l2norm(x, w, *, tm=128, tk=512):
    """[M, K] @ [K, N] followed by row-wise l2norm, returns [M, N] float32.

    Zero-pads M/K/N to tile-aligned sizes (zeros are exact no-ops for both the
    matmul and the norm), casts operands to bf16 for the MXU, accumulates in
    f32, and normalizes in the last-K epilogue.
    """
    M, K = x.shape
    K2, N = w.shape
    assert K == K2

    Mp = _round_up(max(M, 8), 8)
    tm = min(tm, Mp)
    Mp = _round_up(Mp, tm)

    Np = _round_up(N, 128)

    Kp = _round_up(K, 128)
    tk = min(tk, Kp)
    Kp = _round_up(Kp, tk)

    x_p = jnp.zeros((Mp, Kp), jnp.bfloat16).at[:M, :K].set(
        x.astype(jnp.bfloat16)
    )
    w_p = jnp.zeros((Kp, Np), jnp.bfloat16).at[:K, :N].set(
        w.astype(jnp.bfloat16)
    )

    out = pl.pallas_call(
        _encode_l2norm_kernel,
        out_shape=jax.ShapeDtypeStruct((Mp, Np), jnp.float32),
        grid_spec=pltpu.PrefetchScalarGridSpec(
            num_scalar_prefetch=0,
            grid=(Mp // tm, Kp // tk),
            in_specs=[
                pl.BlockSpec((tm, tk), lambda i, k: (i, k)),
                pl.BlockSpec((tk, Np), lambda i, k: (k, 0)),
            ],
            out_specs=pl.BlockSpec((tm, Np), lambda i, k: (i, 0)),
            scratch_shapes=[pltpu.VMEM((tm, Np), jnp.float32)],
        ),
        compiler_params=pltpu.CompilerParams(
            dimension_semantics=("parallel", "arbitrary"),
        ),
    )(x_p, w_p)
    return out[:M, :N]


def pallas_cosine_sim(im_n, s_n, *, tbi=128, tbj=128):
    """Similarity of pre-normalized embeddings: [Bi, D] x [Bj, D] -> [Bi, Bj].

    Tiled over (Bi//tbi, Bj//tbj) with D whole per block; rows are zero-padded
    to keep output stores lane-dense (padded rows give zero rows/cols that are
    sliced off).
    """
    Bi, D = im_n.shape
    Bj, D2 = s_n.shape
    assert D == D2

    Dp = _round_up(D, 128)

    Bip = _round_up(max(Bi, 8), 8)
    tbi = min(tbi, Bip)
    Bip = _round_up(Bip, tbi)

    Bjp = _round_up(Bj, 128)
    tbj = min(tbj, Bjp)
    Bjp = _round_up(Bjp, tbj)

    im_p = jnp.zeros((Bip, Dp), jnp.float32).at[:Bi, :D].set(
        im_n.astype(jnp.float32)
    )
    s_p = jnp.zeros((Bjp, Dp), jnp.float32).at[:Bj, :D].set(
        s_n.astype(jnp.float32)
    )

    out = pl.pallas_call(
        _sim_kernel,
        out_shape=jax.ShapeDtypeStruct((Bip, Bjp), jnp.float32),
        grid_spec=pltpu.PrefetchScalarGridSpec(
            num_scalar_prefetch=0,
            grid=(Bip // tbi, Bjp // tbj),
            in_specs=[
                pl.BlockSpec((tbi, Dp), lambda i, j: (i, 0)),
                pl.BlockSpec((tbj, Dp), lambda i, j: (j, 0)),
            ],
            out_specs=pl.BlockSpec((tbi, tbj), lambda i, j: (i, j)),
        ),
        compiler_params=pltpu.CompilerParams(
            dimension_semantics=("parallel", "parallel"),
        ),
    )(im_p, s_p)
    return out[:Bi, :Bj]


# ----------------------------------------------------------------------------
# UrbanCross_zeroshot forward (synthetic CLIP encoders + Pallas cosine_sim)
# ----------------------------------------------------------------------------
def urbancross_zeroshot_forward(img, text_tokens, params):
    """
    img:          [B, C, H, W] float32 (NCHW, as PyTorch)
    text_tokens:  [B, T] int32 token ids
    returns:      sim_img2text [B, B] float32
    """
    B = img.shape[0]

    # --- image tower (stand-in for clip_model.encode_image) ---
    img_flat = img.reshape(B, -1)                              # [B, C*H*W]
    img_emb_n = pallas_encode_l2norm(img_flat, params["w_img"])  # [B, D], unit rows

    # --- text tower (stand-in for clip_model.encode_text) ---
    # TODO(synk): token-embedding gather + mean-pool kept as XLA ops; at real
    # CLIP sizes (T=77, E=512) this could be fused via scalar-prefetch.
    tok_emb = jnp.take(params["tok_table"], text_tokens, axis=0)  # [B, T, E]
    pooled = jnp.mean(tok_emb, axis=1)                            # [B, E]
    text_emb_n = pallas_encode_l2norm(pooled, params["w_txt"])    # [B, D], unit rows

    # --- cosine similarity (l2norm already fused into the encoder epilogue) ---
    sim_img2text = pallas_cosine_sim(img_emb_n, text_emb_n)       # [B, B]
    return sim_img2text


def init_params(key, c, h, w, vocab, tok_dim, embed_dim):
    k1, k2, k3 = jax.random.split(key, 3)
    return {
        "w_img": jax.random.normal(k1, (c * h * w, embed_dim), jnp.float32) * 0.02,
        "tok_table": jax.random.normal(k2, (vocab, tok_dim), jnp.float32) * 0.02,
        "w_txt": jax.random.normal(k3, (tok_dim, embed_dim), jnp.float32) * 0.02,
    }


if __name__ == "__main__":
    key = jax.random.PRNGKey(0)
    B, C, H, W = 4, 3, 16, 16
    T, VOCAB, TOK_DIM = 8, 64, 32
    EMBED_DIM = 128  # CLIP ViT-B-16 uses 512; scaled down for a small test

    k_img, k_txt, k_par = jax.random.split(key, 3)
    img = jax.random.normal(k_img, (B, C, H, W), jnp.float32)
    text = jax.random.randint(k_txt, (B, T), 0, VOCAB, jnp.int32)
    params = init_params(k_par, C, H, W, VOCAB, TOK_DIM, EMBED_DIM)

    sim = urbancross_zeroshot_forward(img, text, params)
    sim = jax.block_until_ready(sim)

    # sanity: [B, B] float32, values in [-1, 1] (cosine similarity; embeddings
    # are unit-normalized in f32, so only f32 rounding can exceed the bound)
    assert sim.shape == (B, B)
    assert sim.dtype == jnp.float32
    assert bool(jnp.all(jnp.abs(sim) <= 1.0 + 1e-4))
    assert bool(jnp.all(jnp.isfinite(sim)))

    print("KERNEL_OK")
</pallas_src>

<mosaic_0001>
module attributes {stable_mosaic.version = 11 : i64} {
  func.func @_encode_l2norm_kernel(%arg0: i32, %arg1: i32, %arg2: memref<8x512xbf16, #tpu.memory_space<vmem>>, %arg3: memref<512x128xbf16, #tpu.memory_space<vmem>>, %arg4: memref<8x128xf32, #tpu.memory_space<vmem>>, %arg5: memref<8x128xf32, #tpu.memory_space<vmem>>) attributes {dimension_semantics = [#tpu.dimension_semantics<parallel>, #tpu.dimension_semantics<arbitrary>], iteration_bounds = array<i64: 1, 2>, scalar_prefetch = 0 : i64, scratch_operands = 1 : i64, tpu.core_type = #tpu.core_type<tc>, window_params = [{transform_indices = @transform_0, window_bounds = array<i64: 8, 512>}, {transform_indices = @transform_1, window_bounds = array<i64: 512, 128>}, {transform_indices = @transform_2, window_bounds = array<i64: 8, 128>}]} {
    %c0_i32 = arith.constant 0 : i32
    %0 = arith.cmpi eq, %arg1, %c0_i32 : i32
    %1 = arith.extui %0 : i1 to i32
    %c0_i32_0 = arith.constant 0 : i32
    %2 = arith.cmpi ne, %1, %c0_i32_0 : i32
    scf.if %2 {
      %cst_9 = arith.constant 0.000000e+00 : f32
      %12 = vector.broadcast %cst_9 : f32 to vector<8x128xf32>
      %c0_10 = arith.constant 0 : index
      %c0_11 = arith.constant 0 : index
      %13 = vector.load %arg5[%c0_10, %c0_11] : memref<8x128xf32, #tpu.memory_space<vmem>>, vector<8x128xf32>
      tpu.vector_store %arg5[%c0_10, %c0_11], %12 {strides = array<i32>} : memref<8x128xf32, #tpu.memory_space<vmem>>, vector<8x128xf32>,
    } else {
    }
    %c0 = arith.constant 0 : index
    %c0_1 = arith.constant 0 : index
    %3 = vector.load %arg5[%c0, %c0_1] : memref<8x128xf32, #tpu.memory_space<vmem>>, vector<8x128xf32>
    %c0_2 = arith.constant 0 : index
    %c0_3 = arith.constant 0 : index
    %4 = vector.load %arg2[%c0_2, %c0_3] : memref<8x512xbf16, #tpu.memory_space<vmem>>, vector<8x512xbf16>
    %c0_4 = arith.constant 0 : index
    %c0_5 = arith.constant 0 : index
    %5 = vector.load %arg3[%c0_4, %c0_5] : memref<512x128xbf16, #tpu.memory_space<vmem>>, vector<512x128xbf16>
    %cst = arith.constant dense<0.000000e+00> : vector<8x128xf32>
    %6 = tpu.matmul %4, %5, %cst {dimension_numbers = #tpu.dot_dimension_numbers<[1], [0], [0], [1], [0, 0, 1, 1], [], []>} : vector<8x512xbf16>, vector<512x128xbf16>, vector<8x128xf32> -> vector<8x128xf32>
    %7 = arith.addf %3, %6 : vector<8x128xf32>
    %c0_6 = arith.constant 0 : index
    %c0_7 = arith.constant 0 : index
    %8 = vector.load %arg5[%c0_6, %c0_7] : memref<8x128xf32, #tpu.memory_space<vmem>>, vector<8x128xf32>
    tpu.vector_store %arg5[%c0_6, %c0_7], %7 {strides = array<i32>} : memref<8x128xf32, #tpu.memory_space<vmem>>, vector<8x128xf32>,
    %c1_i32 = arith.constant 1 : i32
    %9 = arith.cmpi eq, %arg1, %c1_i32 : i32
    %10 = arith.extui %9 : i1 to i32
    %c0_i32_8 = arith.constant 0 : i32
    %11 = arith.cmpi ne, %10, %c0_i32_8 : i32
    scf.if %11 {
      %c0_9 = arith.constant 0 : index
      %c0_10 = arith.constant 0 : index
      %12 = vector.load %arg5[%c0_9, %c0_10] : memref<8x128xf32, #tpu.memory_space<vmem>>, vector<8x128xf32>
      %13 = arith.mulf %12, %12 : vector<8x128xf32>
      %cst_11 = arith.constant dense<0.000000e+00> : vector<8xf32>
      %14 = vector.multi_reduction <add>, %13, %cst_11 [1] : vector<8x128xf32> to vector<8xf32>
      %15 = vector.shape_cast %14 : vector<8xf32> to vector<8x1xf32>
      %16 = math.sqrt %15 : vector<8x1xf32>
      %cst_12 = arith.constant 9.99999993E-9 : f32
      %17 = vector.broadcast %cst_12 : f32 to vector<8x1xf32>
      %18 = arith.addf %16, %17 : vector<8x1xf32>
      %19 = vector.broadcast %18 : vector<8x1xf32> to vector<8x128xf32>
      %20 = arith.divf %12, %19 : vector<8x128xf32>
      %c0_13 = arith.constant 0 : index
      %c0_14 = arith.constant 0 : index
      %21 = vector.load %arg4[%c0_13, %c0_14] : memref<8x128xf32, #tpu.memory_space<vmem>>, vector<8x128xf32>
      tpu.vector_store %arg4[%c0_13, %c0_14], %20 {strides = array<i32>} : memref<8x128xf32, #tpu.memory_space<vmem>>, vector<8x128xf32>,
    } else {
    }
    return
  }
  func.func @transform_0(%arg0: i32, %arg1: i32) -> (i32, i32) {
    %c0_i32 = arith.constant 0 : i32
    return %arg0, %arg1 : i32, i32
  }
  func.func @transform_1(%arg0: i32, %arg1: i32) -> (i32, i32) {
    %c0_i32 = arith.constant 0 : i32
    %c0_i32_0 = arith.constant 0 : i32
    return %arg1, %c0_i32 : i32, i32
  }
  func.func @transform_2(%arg0: i32, %arg1: i32) -> (i32, i32) {
    %c0_i32 = arith.constant 0 : i32
    %c0_i32_0 = arith.constant 0 : i32
    return %arg0, %c0_i32 : i32, i32
  }
}

</mosaic_0001>

<bundles_post_ra>
// kernel: tpu_custom_call.1
= control target key start
LH: loop header
LB: loop body
LE: loop exit
PB: predicated region body
PF: predicated region fallthrough
CT: control target
= control target key end

     0   :  { %7 = vsyncpa [#allocation4], 0  ;;  %s1303_s0 = inlined_call_operand.hbm [shape: bf16[8,1024], index: 0, kind: input, shape index: {}]   ;;  %s1304_s1 = inlined_call_operand.hbm [shape: bf16[1024,128], index: 1, kind: input, shape index: {}]   ;;  %s1305_s2 = inlined_call_operand.hbm [shape: f32[8,128], index: 2, kind: output, shape index: {}]  }
   0x1   :  { %9 = vsyncpa [#allocation4 + $0x1], 0 }
   0x2   :  { %10 = vsyncpa [#allocation7], 0 }
   0x3   :  { %12 = vsyncpa [#allocation7 + $0x1], 0 }
   0x4   :  { %13 = vsyncpa [#allocation5], 0  ;;  %s1064_s9 = smov 0   ;;  %s1066_s10 = smov 0  }
   0x5   :  { %s1068_s11 = smov 0   ;;  %s1070_s12 = smov 0  }
   0x6   :  { %s1072_s13 = smov 0   ;;  %s1074_s14 = smov 0  }
   0x7 LB: > { %s687_s15 = sadd.s32 4294967295, %s1041_s14   ;;  %s28_s16 = sadd.s32 1, %s1037_s13  ;;  %s1041_s14 = sphi %s1074_s14, %s19_s14   ;;  %s1037_s13 = sphi %s1072_s13, %s1319_s13   ;;  %s1033_s12 = sphi %s1070_s12, %s1318_s12   ;;  %s1029_s11 = sphi %s1068_s11, %s1317_s11   ;;  %s1025_s10 = sphi %s1066_s10, %s1316_s10   ;;  %s1021_s9 = sphi %s1064_s9, %s1315_s9  }
   0x8   : > { %p29_p0 = scmp.ge.s32.totalorder %s28_s16, 2  ;;  %s40_s17 = sadd.s32 1, %s1029_s11 }
   0x9   : > { %p47_p1 = scmp.ne.s32.totalorder %s1029_s11, %s1025_s10  ;;  %p48_p2 = scmp.eq.s32.totalorder %s1041_s14, 0 }
   0xa   : > { %s1321_s16 = smov (%p29_p0, %s28_s16), 0  ;;  %p53_p4 = scmp.ne.s32.totalorder %s1025_s10, %s1021_s9 }
   0xb   : > { %p1100_p3 = por %p48_p2, %p47_p1  ;;  %s36_s19 = ssub.s32 %s1037_s13, %s1321_s16 }
   0xc   : > { %p54_p5 = scmp.eq.s32.totalorder %s687_s15, 0  ;;  %p38_p6 = scmp.eq.s32.totalorder %s36_s19, 0 }
   0xd   : > { %p802_p8 = scmp.lt.s32.totalorder %s1041_s14, 2  ;;  %s1118_s22 = sand.u32 1, %s1029_s11  }
   0xe   : > { %p1109_p7 = por %p54_p5, %p53_p4  ;;  %s741_s23 = sshll.u32 %s1037_s13, 8 }
   0xf   : > { %s1115_s21 = scalar_select %p38_p6, %s1029_s11, %s40_s17  }
  0x10   : > { %s1308_s20 = scalar_select %p1109_p7, 1, 0 }
  0x11   : > { %s690_s24 = sshll.u32 %s1118_s22, 4  ;;  %s1125_s27 = scalar_lea.hbm %s1303_s0, %s741_s23 }
  0x12   : > { %s133_s28 = scalar_lea.vmem [#allocation3], %s690_s24  ;;  %p1129_p9 = pnand %p802_p8, %p1100_p3 }
  0x13   : > { %s143_s29 = sshll.u32 %s133_s28, 4  ;;  %s130_s3 = scalar_lea.sflag [#allocation4], %s1118_s22  ;;  %s1133_s29 = int_to_ptr.vmem [resolvable:$true] %s143_s29 }
  0x14   : > { %s897_s4 = scalar_lea.hbm %s1125_s27, 256  ;;  %p899_p13 = pneg %p1129_p9 }
  0x15   : > { %p898_p12 = scmp.ne.s32.totalorder %s1125_s27, %s897_s4  ;;  %s902_s7 = scalar_lea.hbm %s1303_s0, 512 }
  0x16   : > { %p903_p2 = scmp.lt.u32.totalorder %s1125_s27, %s1303_s0  ;;  %p904_p3 = scmp.lt.u32.totalorder %s902_s7, %s897_s4 }
  0x17   : > { %p900_p0 = pnand %p899_p13, %p898_p12  ;;  %p906_p5 = scmp.lt.u32.totalorder %s897_s4, %s1125_s27 }
  0x18   : > { %p905_p4 = por %p904_p3, %p903_p2 }
  0x19   : > { %p901_p1 = pneg %p900_p0 }
  0x1a   : > { %p907_p6 = por %p906_p5, %p905_p4 }
  0x1c   : > { %p908_p8 = pnand %p907_p6, %p901_p1 }
  0x1e   : > { %911 = shalt.err (!%p908_p8)
}
  0x1f   : > { %s912_s17 = scalar_lea.vmem %s1133_s29, 256  ;;  %s1043_s18 = smov [#allocation3]  }
  0x20   : > { %p913_p12 = scmp.ne.s32.totalorder %s1133_s29, %s912_s17  ;;  %s917_s19 = sshll.u32 %s1043_s18, 4  ;;  %s918_s19 = int_to_ptr.vmem [resolvable:$false] %s917_s19 }
  0x21   : > { %s919_s23 = scalar_lea.vmem %s918_s19, 512  ;;  %p920_p11 = scmp.lt.s32.totalorder %s1133_s29, %s918_s19 }
  0x22   : > { %p915_p0 = pnand %p913_p12, %p899_p13  ;;  %p921_p2 = scmp.lt.s32.totalorder %s919_s23, %s912_s17 }
  0x24   : > { %p916_p10 = pneg %p915_p0  ;;  %p922_p3 = por %p921_p2, %p920_p11 }
  0x26   : > { %p923_p4 = pnand %p922_p3, %p916_p10 }
  0x28   : > { %926 = shalt.err (!%p923_p4)
}
  0x29   : > { %798 = dma.hbm_to_vmem [thread:$0]  (!%p1129_p9), %s1125_s27, 256, %s1133_s29, %s130_s3  }
  0x2a   : > { %p1310_p1 = scmp.lt.s32.totalorder %s1041_s14, 3  ;;  %p1311_p5 = scmp.ge.s32.totalorder %s1041_s14, 1 }
  0x2b   : > { %s693_s25 = sshll.u32 %s1118_s22, 8  ;;  %s742_s26 = sshll.u32 %s1037_s13, 12 }
  0x2c   : > { %p1167_p6 = pnand %p1311_p5, %p1310_p1  ;;  %s1176_s5 = scalar_lea.hbm %s1304_s1, %s742_s26 }
  0x2d   : > { %s154_s6 = scalar_lea.vmem [#allocation6], %s693_s25  ;;  %s151_s27 = scalar_lea.sflag [#allocation7], %s1118_s22 }
  0x2e   : > { %s161_s7 = sshll.u32 %s154_s6, 4  ;;  %s927_s29 = scalar_lea.hbm %s1176_s5, 4096  ;;  %s1178_s7 = int_to_ptr.vmem [resolvable:$true] %s161_s7 }
  0x2f   : > { %p928_p10 = scmp.ne.s32.totalorder %s1176_s5, %s927_s29  ;;  %s932_s9 = scalar_lea.hbm %s1304_s1, 8192 }
  0x30   : > { %p933_p12 = scmp.lt.u32.totalorder %s1176_s5, %s1304_s1  ;;  %p934_p0 = scmp.lt.u32.totalorder %s932_s9, %s927_s29 }
  0x31   : > { %p930_p11 = pnand %p928_p10, %p899_p13  ;;  %p936_p3 = scmp.lt.u32.totalorder %s927_s29, %s1176_s5 }
  0x32   : > { %p935_p2 = por %p934_p0, %p933_p12 }
  0x33   : > { %p931_p8 = pneg %p930_p11 }
  0x34   : > { %p937_p4 = por %p936_p3, %p935_p2 }
  0x36   : > { %p938_p1 = pnand %p937_p4, %p931_p8 }
  0x38   : > { %941 = shalt.err (!%p938_p1)
}
  0x39   : > { %s942_s19 = scalar_lea.vmem %s1178_s7, 4096  ;;  %s1044_s23 = smov [#allocation6]  }
  0x3a   : > { %p943_p5 = scmp.ne.s32.totalorder %s1178_s7, %s942_s19  ;;  %s947_s25 = sshll.u32 %s1044_s23, 4  ;;  %s948_s25 = int_to_ptr.vmem [resolvable:$false] %s947_s25 }
  0x3b   : > { %s949_s26 = scalar_lea.vmem %s948_s25, 8192  ;;  %p950_p7 = scmp.lt.s32.totalorder %s1178_s7, %s948_s25 }
  0x3c   : > { %p945_p10 = pnand %p943_p5, %p899_p13  ;;  %p951_p12 = scmp.lt.s32.totalorder %s949_s26, %s942_s19 }
  0x3e   : > { %p946_p11 = pneg %p945_p10  ;;  %p952_p0 = por %p951_p12, %p950_p7 }
  0x40   : > { %p953_p2 = pnand %p952_p0, %p946_p11 }
  0x42   : > { %956 = shalt.err (!%p953_p2)
}
  0x43   : > { %s1045_s28 = smov 64   ;;  %s1046_s4 = smov 4  }
  0x44   : > { %801 = dma.hbm_to_vmem [thread:$0]  (!%p1129_p9), %s1176_s5, 4096, %s1178_s7, %s151_s27, %s1045_s28, %s1045_s28, %s1046_s4  }
  0x45   : > { %173 = sbr.rel (%p1167_p6) target bundleno = 551 (0x227), region = 28  ;;  %s175_s6 = sand.u32 (!%p1167_p6), 1, %s1025_s10  }
  0x46   : > { %s697_s29 = sshll.u32 (!%p1167_p6), %s175_s6, 4  ;;  %s176_s3 = scalar_lea.sflag (!%p1167_p6), [#allocation4], %s175_s6 }
  0x47   : > { %s1209_s8 = scalar_lea.vmem (!%p1167_p6), [#allocation3], %s697_s29  ;;  %p1313_p7 = scmp.ne.s32.totalorder (!%p1167_p6), %s1308_s20, 0 }
  0x4c   : > { %1008 = dma.done.wait (%p1313_p7), %s176_s3, 256  }
  0x4d   : > { %1010 = vsyncadd (%p1313_p7), %s176_s3, 4294967040  ;;  %s698_s9 = sshll.u32 %s175_s6, 8  ;;  %s185_s30 = scalar_lea.sflag [#allocation7], %s175_s6 }
  0x4e   : > { %s1215_s22 = scalar_lea.vmem [#allocation6], %s698_s9 }
  0x4f   : > { %1012 = dma.done.wait (%p1313_p7), %s185_s30, 4096  }
  0x50   : > { %1014 = vsyncadd (%p1313_p7), %s185_s30, 4294963200  ;;  %p699_p9 = scmp.ne.s32.totalorder %s1033_s12, 0 }
  0x51   : > { %v1047_v0 = vmov (!%p699_p9), 0.0  }
  0x52   : > { %215 = sbr.rel (%p699_p9) target bundleno = 89 (0x59), region = 40  ;;  %216 = vst [vmem:[#allocation2] sm:$0xff] (!%p699_p9), %v1047_v0 }
  0x59 PF: > { %v857_v1 = vld [vmem:[%s1215_s22 + $0x40] sm:$0xff]   ;;  %v861_v5 = vld [vmem:[%s1215_s22 + $0x48] sm:$0xff]   ;;  %v865_v9 = vld [vmem:[%s1215_s22 + $0x50] sm:$0xff]   ;;  %p736_p13 = scmp.ne.s32.totalorder %s1033_s12, 1 }
  0x5a   : > { %v858_v2 = vld [vmem:[%s1215_s22 + $0xc0] sm:$0xff]   ;;  %743 = vmatprep.subr.bf16.mxu0 %v857_v1  ;;  %v862_v6 = vld [vmem:[%s1215_s22 + $0xc8] sm:$0xff]   ;;  %v866_v10 = vld [vmem:[%s1215_s22 + $0xd0] sm:$0xff]  }
  0x5b   : > { %v859_v3 = vld [vmem:[%s1215_s22] sm:$0xff]   ;;  %765 = vmatprep.subr.bf16.mxu1 %v858_v2  ;;  %v863_v7 = vld [vmem:[%s1215_s22 + $0x8] sm:$0xff]   ;;  %v867_v11 = vld [vmem:[%s1215_s22 + $0x10] sm:$0xff]  }
  0x5c   : > { %v860_v4 = vld [vmem:[%s1215_s22 + $0x80] sm:$0xff]   ;;  %744 = vmatpush3.bf16.msra.mxu0 %v859_v3  ;;  %v864_v8 = vld [vmem:[%s1215_s22 + $0x88] sm:$0xff]   ;;  %v868_v12 = vld [vmem:[%s1215_s22 + $0x90] sm:$0xff]  }
  0x5d   : > { %766 = vmatpush3.bf16.msra.mxu1 %v860_v4  ;;  %745 = vmatprep.subr.bf16.mxu0 %v861_v5  ;;  %v869_v13 = vld [vmem:[%s1215_s22 + $0x58] sm:$0xff]   ;;  %v873_v17 = vld [vmem:[%s1215_s22 + $0x60] sm:$0xff]   ;;  %v877_v21 = vld [vmem:[%s1215_s22 + $0x68] sm:$0xff]  }
  0x5e   : > { %767 = vmatprep.subr.bf16.mxu1 %v862_v6  ;;  %v870_v14 = vld [vmem:[%s1215_s22 + $0xd8] sm:$0xff]   ;;  %v874_v18 = vld [vmem:[%s1215_s22 + $0xe0] sm:$0xff]   ;;  %v878_v22 = vld [vmem:[%s1215_s22 + $0xe8] sm:$0xff]  }
  0x5f   : > { %v871_v15 = vld [vmem:[%s1215_s22 + $0x18] sm:$0xff]   ;;  %v875_v19 = vld [vmem:[%s1215_s22 + $0x20] sm:$0xff]   ;;  %v879_v23 = vld [vmem:[%s1215_s22 + $0x28] sm:$0xff]  }
  0x60   : > { %746 = vmatpush3.bf16.msra.mxu0 %v863_v7  ;;  %v872_v16 = vld [vmem:[%s1215_s22 + $0x98] sm:$0xff]   ;;  %v876_v20 = vld [vmem:[%s1215_s22 + $0xa0] sm:$0xff]   ;;  %v880_v24 = vld [vmem:[%s1215_s22 + $0xa8] sm:$0xff]  }
  0x61   : > { %768 = vmatpush3.bf16.msra.mxu1 %v864_v8  ;;  %747 = vmatprep.subr.bf16.mxu0 %v865_v9  ;;  %v881_v25 = vld [vmem:[%s1215_s22 + $0x70] sm:$0xff]   ;;  %v885_v29 = vld [vmem:[%s1215_s22 + $0x78] sm:$0xff]  }
  0x62   : > { %769 = vmatprep.subr.bf16.mxu1 %v866_v10  ;;  %v882_v26 = vld [vmem:[%s1215_s22 + $0xf0] sm:$0xff]   ;;  %v886_v30 = vld [vmem:[%s1215_s22 + $0xf8] sm:$0xff]  }
  0x63   : > { %v883_v27 = vld [vmem:[%s1215_s22 + $0x30] sm:$0xff]   ;;  %v887_v31 = vld [vmem:[%s1215_s22 + $0x38] sm:$0xff]  }
  0x64   : > { %748 = vmatpush3.bf16.msra.mxu0 %v867_v11  ;;  %v884_v28 = vld [vmem:[%s1215_s22 + $0xb0] sm:$0xff]   ;;  %v888_v32 = vld [vmem:[%s1215_s22 + $0xb8] sm:$0xff]  }
  0x65   : > { %770 = vmatpush3.bf16.msra.mxu1 %v868_v12  ;;  %749 = vmatprep.subr.bf16.mxu0 %v869_v13  ;;  %v218_v33 = vld [vmem:[%s1209_s8] sm:$0xff]  ;;  %v219_v34 = vld [vmem:[%s1209_s8 + $0x8] sm:$0xff] }
  0x66   : > { %771 = vmatprep.subr.bf16.mxu1 %v870_v14  ;;  %v700_v35 = vcombine.low %v218_v33, %v218_v33  ;;  %v701_v36 = vcombine.high %v218_v33, %v218_v33  ;;  %v702_v37 = vcombine.low %v219_v34, %v219_v34  ;;  %v703_v38 = vcombine.high %v219_v34, %v219_v34  ;;  %v217_v47 = vld [vmem:[#allocation2] sm:$0xff] }
  0x68   : > { %750 = vmatpush3.bf16.msra.mxu0 %v871_v15  ;;  %522 = vmatprep.mubr.bf16.mxu0 %v701_v36 }
  0x69   : > { %772 = vmatpush3.bf16.msra.mxu1 %v872_v16  ;;  %751 = vmatprep.subr.bf16.mxu0 %v873_v17 }
  0x6a   : > { %773 = vmatprep.subr.bf16.mxu1 %v874_v18  ;;  %562 = vmatprep.mubr.bf16.mxu1 %v703_v38 }
  0x6c   : > { %752 = vmatpush3.bf16.msra.mxu0 %v875_v19 }
  0x6d   : > { %774 = vmatpush3.bf16.msra.mxu1 %v876_v20  ;;  %753 = vmatprep.subr.bf16.mxu0 %v877_v21 }
  0x6e   : > { %775 = vmatprep.subr.bf16.mxu1 %v878_v22 }
  0x70   : > { %754 = vmatpush3.bf16.msra.mxu0 %v879_v23 }
  0x71   : > { %776 = vmatpush3.bf16.msra.mxu1 %v880_v24  ;;  %755 = vmatprep.subr.bf16.mxu0 %v881_v25 }
  0x72   : > { %777 = vmatprep.subr.bf16.mxu1 %v882_v26 }
  0x74   : > { %756 = vmatpush3.bf16.msra.mxu0 %v883_v27 }
  0x75   : > { %778 = vmatpush3.bf16.msra.mxu1 %v884_v28  ;;  %757 = vmatprep.subr.bf16.mxu0 %v885_v29 }
  0x76   : > { %779 = vmatprep.subr.bf16.mxu1 %v886_v30 }
  0x78   : > { %758 = vmatpush3.bf16.msra.mxu0 %v887_v31 }
  0x79   : > { %780 = vmatpush3.bf16.msra.mxu1 %v888_v32 }
  0x7b   : > { %523 = vmatmul.mubr.bf16.vlgmr.msra.gmra.mrb[0].mxu0 %v700_v35 }
  0x7c   : > { %563 = vmatmul.mubr.bf16.vlgmr.msra.gmra.mrb[0].mxu1 %v702_v37 }
 0x14e   : > { %v759_v39 = vpop.f32.mrb[0].mxu0 }
 0x14f   : > { %v781_v40 = vpop.f32.mrb[0].mxu1  ;;  %v760_v41 = vpop.f32.mrb[1].mxu0 }
 0x150   : > { %v782_v42 = vpop.f32.mrb[1].mxu1  ;;  %v761_v43 = vadd.f32 %v760_v41, %v759_v39  ;;  %v762_v45 = vpop.f32.mrb[2].mxu0 }
 0x151   : > { %v783_v44 = vadd.f32 %v782_v42, %v781_v40  ;;  %v784_v46 = vpop.f32.mrb[2].mxu1  ;;  %v763_v48 = vpop.f32.mrb[3].mxu0  ;;  %575 = sbr.rel (%p736_p13) target bundleno = 526 (0x20e), region = 44 }
 0x152   : > { %v785_v49 = vpop.f32.mrb[3].mxu1 }
 0x153   : > { %v565_v50 = vadd.f32 %v783_v44, %v761_v43 }
 0x155   : > { %v570_v51 = vadd.f32 %v565_v50, %v217_v47 }
 0x157   : > { %571 = vst [vmem:[#allocation2] sm:$0xff] %v570_v51 }
 0x15e   : > { %v576_v52 = vld [vmem:[#allocation2] sm:$0xff] }
 0x15f   : > { %v577_v53 = vmul.f32 %v576_v52, %v576_v52 }
 0x161   : > { %578 = vadd.xlane.f32.xlu0 %v577_v53 }
 0x1ee   : > { %v579_v54 = vpop.xlane.xlu0 %578 }
 0x1ef   : > { %893 = vrsqrt.f32 %v579_v54  ;;  %vm582_vm0 = vcmp.eq.f32.partialorder %v579_v54, inf  ;;  %v585_v57 = vand.u32 2147483648, %v579_v54  ;;  %vm584_vm1 = vcmp.eq.f32.partialorder %v579_v54, 0.0 }
 0x1f9   : > { %v894_v55 = vpop.eup %893 }
 0x1fa   : > { %v581_v56 = vmul.f32 %v894_v55, %v579_v54 }
 0x1fc   : > { %v583_v58 = vsel %vm582_vm0, %v579_v54, %v581_v56 }
 0x1fd   : > { %v586_v59 = vsel %vm584_vm1, %v585_v57, %v583_v58 }
 0x1fe   : > { %v587_v60 = vadd.f32 1e-08, %v586_v59 }
 0x200   : > { %895 = vrcp.f32 %v587_v60 }
 0x20a   : > { %v896_v61 = vpop.eup %895 }
 0x20b   : > { %v589_v62 = vmul.f32 %v896_v61, %v576_v52 }
 0x20d   : > { %590 = vst [vmem:[#allocation8] sm:$0xff] %v589_v62 }
 0x20e PF: > { %p1259_p6 = scmp.eq.s32.totalorder %s687_s15, 1  ;;  %s1048_s20 = smov [#allocation8]  }
 0x20f   : > { %s600_s24 = sshll.u32 %s1048_s20, 4  ;;  %s601_s24 = int_to_ptr.vmem [resolvable:$true] %s600_s24 }
 0x210   : > { %s957_s5 = scalar_lea.vmem %s601_s24, 128  ;;  %p964_p1 = scmp.lt.s32.totalorder %s601_s24, %s601_s24 }
 0x211   : > { %p958_p8 = scmp.ne.s32.totalorder %s601_s24, %s957_s5  ;;  %p965_p5 = scmp.lt.s32.totalorder %s957_s5, %s957_s5 }
 0x213   : > { %p959_p3 = pnand %p958_p8, %p1259_p6  ;;  %p966_p10 = por %p965_p5, %p964_p1 }
 0x215   : > { %p960_p4 = pneg %p959_p3 }
 0x217   : > { %p967_p11 = pnand %p966_p10, %p960_p4 }
 0x219   : > { %970 = shalt.err (!%p967_p11)
}
 0x21a   : > { %s971_s15 = scalar_lea.hbm %s1305_s2, 128 }
 0x21b   : > { %p972_p12 = scmp.ne.s32.totalorder %s1305_s2, %s971_s15  ;;  %p977_p7 = scmp.lt.u32.totalorder %s971_s15, %s1305_s2 }
 0x21d   : > { %p973_p0 = pnand %p972_p12, %p1259_p6 }
 0x21f   : > { %p974_p2 = pneg %p973_p0 }
 0x221   : > { %p979_p9 = pnand %p977_p7, %p974_p2 }
 0x223   : > { %982 = shalt.err (!%p979_p9)
}
 0x224   : > { %792 = dma.vmem_to_hbm [thread:$0]  (%p1259_p6), %s601_s24, 128, %s1305_s2, [#allocation5]  }
 0x225   : > { %1016 = dma.done.wait (%p1259_p6), [#allocation5], 128  }
 0x226   : > { %1018 = vsyncadd (%p1259_p6), [#allocation5], 4294967168 }
 0x227 PF: > { %s19_s14 = sadd.s32 1, %s1041_s14   ;;  %s1315_s9 = smov %s1025_s10 }
 0x228   : > { %p16_p13 = scmp.ge.s32.totalorder %s19_s14, 4   ;;  %s1316_s10 = smov %s1029_s11 }
 0x229   : > { %s1317_s11 = smov %s1115_s21  ;;  %s1318_s12 = smov %s1037_s13 }
 0x22a   : > { %s1319_s13 = smov %s1321_s16  ;;  %18 = sbr.rel (!%p16_p13) target bundleno = 7 (0x7), region = 87 }
 0x231   :  { %613 = vsyncpa [#allocation4], 1 }
 0x232   :  { %615 = vsyncpa [#allocation4 + $0x1], 1 }
 0x233   :  { %616 = vsyncpa [#allocation7], 1 }
 0x234   :  { %618 = vsyncpa [#allocation7 + $0x1], 1 }
 0x235   :  { %619 = vsyncpa [#allocation5], 1 }
 0x236   :  { %621 = vsyncpa [#allocation5 + $0x1], 1 }

</bundles_post_ra>
